<compile_context>
chip_gen: v5e
topology: v5e:2x2
jax: 0.10.0
libtpu: 0.0.40
codegen_flags: <defaults>
</compile_context>

<pallas_src>
import jax
import jax.numpy as jnp
from jax.experimental import pallas as pl
from jax.experimental.pallas import tpu as pltpu


def _round_up(x, m):
    return (x + m - 1) // m * m


def _masked_norm_l1_kernel(pred_ref, mask_ref, tgt_ref, num_ref):
    """Masked normalized-L1 partial reduction over one (rows, C) tile.

    pred_ref: VMEM (rows, C) native dtype   gathered feature rows
    mask_ref: VMEM (rows, 1) float32        row mask (broadcasts over C)
    tgt_ref : VMEM (rows, C) native dtype   regression targets
    num_ref : VMEM (1, 1, 1) float32        partial numerator for this tile
    """
    pred = pred_ref[...].astype(jnp.float32)
    tgt = tgt_ref[...].astype(jnp.float32)
    m = mask_ref[...]                                    # (rows, 1)

    # target*0 + 1 == 1, so |pred/(tgt+1e-4)*m - 1*m| == m * |pred*inv - 1|.
    inv = pl.reciprocal(tgt + 1e-4, approx=True)         # EUP slot (free)
    err = jnp.abs(pred * inv - 1.0)                      # (rows, C)
    # Masked-out / padded rows are zeroed before they can inject Inf/NaN.
    # (Semantic deviation vs. PyTorch only for pathological target <= -1e-4.)
    masked = jnp.where(m > 0.0, m * err, 0.0)

    num_ref[0] = jnp.sum(masked, keepdims=True)          # (1, 1)


def _norm_reg_l1_from_pred(pred, mask, target, *, row_block=2048):
    """pred: (B, K, C) gathered rows (native dtype); mask: (B, K); target: (B, K, C)."""
    B, K, C = pred.shape
    N = B * K

    pred2 = pred.reshape(N, C)
    tgt2 = target.reshape(N, C)
    mask_f = mask.astype(jnp.float32)
    mask2 = mask_f.reshape(N, 1)

    # Row-block the flattened (B*K) axis; pad with mask=0 rows (contribute 0).
    rows = min(row_block, _round_up(N, 8))
    n_pad = _round_up(N, rows)
    if n_pad != N:
        p = n_pad - N
        pred2 = jnp.pad(pred2, ((0, p), (0, 0)))
        tgt2 = jnp.pad(tgt2, ((0, p), (0, 0)))
        mask2 = jnp.pad(mask2, ((0, p), (0, 0)))
    nsteps = n_pad // rows

    num = pl.pallas_call(
        _masked_norm_l1_kernel,
        out_shape=jax.ShapeDtypeStruct((nsteps, 1, 1), jnp.float32),
        grid=(nsteps,),
        in_specs=[
            pl.BlockSpec((rows, C), lambda i: (i, 0)),   # pred rows
            pl.BlockSpec((rows, 1), lambda i: (i, 0)),   # mask
            pl.BlockSpec((rows, C), lambda i: (i, 0)),   # target
        ],
        out_specs=pl.BlockSpec((1, 1, 1), lambda i: (i, 0, 0)),
        compiler_params=pltpu.CompilerParams(
            dimension_semantics=("parallel",)),          # independent row tiles
    )(pred2, mask2, tgt2)

    # Denominator depends only on mask (expanded over C channels); do it in XLA.
    den = jnp.sum(mask_f) * C
    return jnp.sum(num) / (den + 1e-4)


def norm_reg_l1_loss_from_feat(feat, mask, ind, target):
    """feat: (B, HW, C) channels-last features; mask/ind: (B, K); target: (B, K, C)."""
    B, HW, C = feat.shape
    idx = jnp.clip(ind.astype(jnp.int32), 0, HW - 1)
    pred = jnp.take_along_axis(feat, idx[:, :, None], axis=1)   # (B, K, C)
    return _norm_reg_l1_from_pred(pred, mask, target)


def norm_reg_l1_loss(output, mask, ind, target):
    """output: (B, C, H, W) NCHW (PyTorch layout); mask/ind: (B, K); target: (B, K, C)."""
    B, C, H, W = output.shape
    # Gather K columns along the flattened HW axis while still in NCHW, then do the
    # tiny (B, C, K) -> (B, K, C) transpose; replaces the old full-map NCHW->NHWC
    # relayout + in-kernel HW streaming (the two dominant costs per the review).
    # TODO(synk): a fully in-kernel gather straight from the NCHW HBM ref would need
    # per-index strided (C, 1) column DMAs; at CenterNet C (2-4) XLA's gather is
    # cheaper, so the gather stays in the wrapper.
    feat = output.reshape(B, C, H * W)
    idx = jnp.clip(ind.astype(jnp.int32), 0, H * W - 1)
    pred = jnp.take_along_axis(feat, idx[:, None, :], axis=2)   # (B, C, K)
    pred = jnp.transpose(pred, (0, 2, 1))                       # (B, K, C)
    return _norm_reg_l1_from_pred(pred, mask, target)


def _reference(output, mask, ind, target):
    """Pure-JAX reference replicating the PyTorch forward exactly."""
    B, C, H, W = output.shape
    feat = jnp.transpose(output, (0, 2, 3, 1)).reshape(B, H * W, C)
    pred = jnp.take_along_axis(feat, ind[:, :, None].astype(jnp.int32), axis=1)  # (B,K,C)
    mask_e = jnp.broadcast_to(mask[:, :, None].astype(jnp.float32), pred.shape)
    pred = pred / (target + 1e-4)
    tgt1 = target * 0 + 1
    loss = jnp.sum(jnp.abs(pred * mask_e - tgt1 * mask_e))
    return loss / (jnp.sum(mask_e) + 1e-4)


if __name__ == "__main__":
    B, C, H, W, K = 2, 4, 16, 16, 8
    key = jax.random.PRNGKey(0)
    k1, k2, k3, k4 = jax.random.split(key, 4)

    output = jax.random.normal(k1, (B, C, H, W), dtype=jnp.float32)
    ind = jax.random.randint(k2, (B, K), 0, H * W, dtype=jnp.int32)
    mask = (jax.random.uniform(k3, (B, K)) > 0.3).astype(jnp.float32)
    # keep targets away from zero so the 1/(target+1e-4) normalization is well-behaved
    target = jax.random.uniform(k4, (B, K, C), minval=0.5, maxval=2.0, dtype=jnp.float32)

    loss = jax.block_until_ready(norm_reg_l1_loss(output, mask, ind, target))
    ref = jax.block_until_ready(_reference(output, mask, ind, target))
    # Tolerance is loosened because the kernel uses the EUP approximate reciprocal
    # (pl.reciprocal(..., approx=True)) instead of a true divide, per the perf review.
    assert jnp.allclose(loss, ref, rtol=1e-2, atol=1e-4), (loss, ref)

    print("KERNEL_OK")
</pallas_src>

<mosaic_0001>
module attributes {stable_mosaic.version = 11 : i64} {
  func.func @_masked_norm_l1_kernel(%arg0: i32, %arg1: memref<16x4xf32, #tpu.memory_space<vmem>>, %arg2: memref<16x1xf32, #tpu.memory_space<vmem>>, %arg3: memref<16x4xf32, #tpu.memory_space<vmem>>, %arg4: memref<1x1x1xf32, #tpu.memory_space<vmem>>) attributes {dimension_semantics = [#tpu.dimension_semantics<parallel>], iteration_bounds = array<i64: 1>, scalar_prefetch = 0 : i64, scratch_operands = 0 : i64, tpu.core_type = #tpu.core_type<tc>, window_params = [{transform_indices = @transform_0, window_bounds = array<i64: 16, 4>}, {transform_indices = @transform_1, window_bounds = array<i64: 16, 1>}, {transform_indices = @transform_2, window_bounds = array<i64: 16, 4>}, {transform_indices = @transform_3, window_bounds = array<i64: 1, 1, 1>}]} {
    %c0 = arith.constant 0 : index
    %c0_0 = arith.constant 0 : index
    %0 = vector.load %arg1[%c0, %c0_0] : memref<16x4xf32, #tpu.memory_space<vmem>>, vector<16x4xf32>
    %c0_1 = arith.constant 0 : index
    %c0_2 = arith.constant 0 : index
    %1 = vector.load %arg3[%c0_1, %c0_2] : memref<16x4xf32, #tpu.memory_space<vmem>>, vector<16x4xf32>
    %c0_3 = arith.constant 0 : index
    %c0_4 = arith.constant 0 : index
    %2 = vector.load %arg2[%c0_3, %c0_4] : memref<16x1xf32, #tpu.memory_space<vmem>>, vector<16x1xf32>
    %cst = arith.constant 9.99999974E-5 : f32
    %3 = vector.broadcast %cst : f32 to vector<16x4xf32>
    %4 = arith.addf %1, %3 : vector<16x4xf32>
    %5 = tpu.reciprocal %4 {approx = true} : vector<16x4xf32> -> vector<16x4xf32>
    %6 = arith.mulf %0, %5 : vector<16x4xf32>
    %cst_5 = arith.constant 1.000000e+00 : f32
    %7 = vector.broadcast %cst_5 : f32 to vector<16x4xf32>
    %8 = arith.subf %6, %7 : vector<16x4xf32>
    %9 = math.absf %8 : vector<16x4xf32>
    %cst_6 = arith.constant 0.000000e+00 : f32
    %10 = vector.broadcast %cst_6 : f32 to vector<16x1xf32>
    %11 = arith.cmpf ogt, %2, %10 : vector<16x1xf32>
    %12 = vector.broadcast %2 : vector<16x1xf32> to vector<16x4xf32>
    %13 = arith.mulf %12, %9 : vector<16x4xf32>
    %cst_7 = arith.constant 0.000000e+00 : f32
    %14 = vector.shape_cast %11 : vector<16x1xi1> to vector<16x1xi1>
    %15 = vector.broadcast %14 : vector<16x1xi1> to vector<16x4xi1>
    %16 = vector.broadcast %cst_7 : f32 to vector<16x4xf32>
    %17 = arith.select %15, %13, %16 : vector<16x4xi1>, vector<16x4xf32>
    %18 = vector.shape_cast %17 : vector<16x4xf32> to vector<1x16x4xf32>
    %cst_8 = arith.constant dense<0.000000e+00> : vector<1xf32>
    %19 = vector.multi_reduction <add>, %18, %cst_8 [1, 2] : vector<1x16x4xf32> to vector<1xf32>
    %20 = vector.shape_cast %19 : vector<1xf32> to vector<1x1x1xf32>
    %21 = vector.extract %20[0, 0, 0] : f32 from vector<1x1x1xf32>
    %22 = vector.broadcast %21 : f32 to vector<1x1xf32>
    %c0_9 = arith.constant 0 : index
    %c0_10 = arith.constant 0 : index
    %c0_11 = arith.constant 0 : index
    %23 = vector.load %arg4[%c0_9, %c0_10, %c0_11] : memref<1x1x1xf32, #tpu.memory_space<vmem>>, vector<1x1x1xf32>
    %24 = vector.shape_cast %23 : vector<1x1x1xf32> to vector<1x1xf32>
    %25 = vector.shape_cast %22 : vector<1x1xf32> to vector<1x1x1xf32>
    tpu.vector_store %arg4[%c0_9, %c0_10, %c0_11], %25 {strides = array<i32>} : memref<1x1x1xf32, #tpu.memory_space<vmem>>, vector<1x1x1xf32>,
    return
  }
  func.func @transform_0(%arg0: i32) -> (i32, i32) {
    %c0_i32 = arith.constant 0 : i32
    %c0_i32_0 = arith.constant 0 : i32
    return %arg0, %c0_i32 : i32, i32
  }
  func.func @transform_1(%arg0: i32) -> (i32, i32) {
    %c0_i32 = arith.constant 0 : i32
    %c0_i32_0 = arith.constant 0 : i32
    return %arg0, %c0_i32 : i32, i32
  }
  func.func @transform_2(%arg0: i32) -> (i32, i32) {
    %c0_i32 = arith.constant 0 : i32
    %c0_i32_0 = arith.constant 0 : i32
    return %arg0, %c0_i32 : i32, i32
  }
  func.func @transform_3(%arg0: i32) -> (i32, i32, i32) {
    %c0_i32 = arith.constant 0 : i32
    %c0_i32_0 = arith.constant 0 : i32
    %c0_i32_1 = arith.constant 0 : i32
    return %arg0, %c0_i32, %c0_i32_0 : i32, i32, i32
  }
}

</mosaic_0001>

<bundles_post_ra>
// kernel: tpu_custom_call.1
= control target key start
LH: loop header
LB: loop body
LE: loop exit
PB: predicated region body
PF: predicated region fallthrough
CT: control target
= control target key end

     0   :  { %s170_s0 = inlined_call_operand.vmem [shape: f32[16,4], index: 0, kind: input, shape index: {}]   ;;  %s171_s1 = inlined_call_operand.vmem [shape: f32[16,1], index: 1, kind: input, shape index: {}]   ;;  %s172_s2 = inlined_call_operand.vmem [shape: f32[16,4], index: 2, kind: input, shape index: {}]   ;;  %s173_s3 = inlined_call_operand.hbm [shape: f32[1,1,1], index: 3, kind: output, shape index: {}]  }
   0x1   :  { %v19_v0 = vld [vmem:[%s171_s1] sm:$0xff] }
   0x2   :  { %8 = vsyncpa [#allocation3], 0  ;;  %v127_v1 = vmov 0   ;;  %vm31_vm0 = vcmp.gt.f32.partialorder %v19_v0, 0.0  ;;  %v20_v3 = vld [vmem:[%s171_s1 + $0x8] sm:$0xff]  ;;  %v17_v5 = vld [vmem:[%s172_s2] sm:$0xff] }
   0x3   :  { %95 = vset.pattern.permute.xlu0 %v127_v1  ;;  %96 = vset.pattern.permute.xlu1 %v127_v1  ;;  %v45_v2 = vsel %vm31_vm0, 1, %v127_v1  ;;  %vm32_vm1 = vcmp.gt.f32.partialorder %v20_v3, 0.0  ;;  %v21_v6 = vadd.f32 0.0001, %v17_v5  ;;  %v18_v7 = vld [vmem:[%s172_s2 + $0x8] sm:$0xff]  ;;  %v15_v10 = vld [vmem:[%s170_s0] sm:$0xff] }
   0x4   :  { %35 = vperm.xlu0 %95, %v19_v0   ;;  %48 = vperm.xlu1 %96, %v45_v2   ;;  %v46_v4 = vsel %vm32_vm1, 1, %v127_v1  ;;  %v22_v8 = vadd.f32 0.0001, %v18_v7  ;;  %v16_v13 = vld [vmem:[%s170_s0 + $0x8] sm:$0xff]  ;;  %vm57_vm3 = vcmask 31744   ;;  %s128_s0 = smov [#allocation2]  }
   0x5   :  { %97 = vrcp.f32 %v21_v6  ;;  %s78_s2 = sshll.u32 %s128_s0, 4  ;;  %s80_s25 = sshll.u32 %s173_s3, 4  ;;  %vm71_vm5 = vcmask 0   ;;  %s79_s2 = int_to_ptr.vmem [resolvable:$true] %s78_s2  ;;  %s81_s25 = int_to_ptr.hbm [resolvable:$true] %s80_s25 }
   0x6   :  { %99 = vrcp.f32 %v22_v8 }
   0xb   :  { %v98_v9 = vpop.eup %97 }
   0xc   :  { %40 = vperm.xlu0 %95, %v20_v3   ;;  %51 = vperm.xlu1 %96, %v46_v4   ;;  %v25_v11 = vmul.f32 %v98_v9, %v15_v10  ;;  %v100_v12 = vpop.eup %99 }
   0xd   :  { %v26_v15 = vmul.f32 %v100_v12, %v16_v13 }
   0xe   :  { %v89_v14 = vadd.f32 -1.0, %v25_v11 }
   0xf   :  { %v90_v19 = vadd.f32 -1.0, %v26_v15 }
  0x10   :  { %v29_v17 = vand.u32 2147483647, %v89_v14 }
  0x11   :  { %v30_v21 = vand.u32 2147483647, %v90_v19 }
  0x76   :  { %v36_v16 = vpop.permute.xlu0 %35  ;;  %v49_v18 = vpop.permute.xlu1 %48 }
  0x77   :  { %v43_v20 = vmul.f32 %v36_v16, %v29_v17  ;;  %vm53_vm2 = vcmp.eq.s32.totalorder %v49_v18, 1 }
  0x79   :  { %v55_v23 = vsel %vm53_vm2, %v43_v20, 0.0 }
  0x7a   :  { %v58_v27 = vsel %vm57_vm3, %v55_v23, 0.0 }
  0x7e   :  { %v41_v22 = vpop.permute.xlu0 %40  ;;  %v52_v25 = vpop.permute.xlu1 %51 }
  0x7f   :  { %v44_v24 = vmul.f32 %v41_v22, %v30_v21  ;;  %vm54_vm4 = vcmp.eq.s32.totalorder %v52_v25, 1 }
  0x81   :  { %v56_v26 = vsel %vm54_vm4, %v44_v24, 0.0 }
  0x82   :  { %v59_v28 = vsel %vm57_vm3, %v56_v26, 0.0 }
  0x83   :  { %v60_v29 = vadd.f32 %v59_v28, %v58_v27 }
  0x85   :  { %61 = vadd.xlane.f32.xlu2 %v60_v29 }
  0xf8   :  { %v62_v30 = vpop.xlane.xlu2 %61 }
  0xf9   :  { %v63_v31 = vrot.slane %v62_v30, 4 }
  0xfb   :  { %v64_v32 = vadd.f32 %v63_v31, %v62_v30 }
  0xfd   :  { %v65_v33 = vrot.slane %v64_v32, 2 }
  0xff   :  { %v66_v34 = vadd.f32 %v65_v33, %v64_v32 }
 0x101   :  { %v67_v35 = vrot.slane %v66_v34, 1 }
 0x103   :  { %v68_v36 = vadd.f32 %v67_v35, %v66_v34 }
 0x105   :  { %91 = vpush %v68_v36 }
 0x136   :  { %s92_s26 = spop %91 }
 0x137   :  { %v70_v37 = vstv %s92_s26 }
 0x138   :  { %72 = vst.msk [vmem:[#allocation2] sm:$0x1] %vm71_vm5, %v70_v37 }
 0x139   :  { %83 = dma.vmem_to_hbm [thread:$0]  %s79_s2, 16, %s81_s25, [#allocation3]  }
 0x13a   :  { %125 = dma.done.wait [#allocation3], 16  }
 0x13b   :  { %126 = vsyncadd [#allocation3], 4294967280 }
 0x13c   :  { %88 = vsyncpa [#allocation3], 1 }

</bundles_post_ra>
